<compile_context>
chip_gen: v7x
topology: tpu7x:2x2x1
jax: 0.10.0
libtpu: 0.0.40
codegen_flags: <defaults>
</compile_context>

<pallas_src>
import functools
import math

import jax
import jax.numpy as jnp
import numpy as np
from jax.experimental import pallas as pl
from jax.experimental.pallas import tpu as pltpu


# ----------------------------------------------------------------------------
# Small helpers
# ----------------------------------------------------------------------------
def _round_up(x, m):
    return ((x + m - 1) // m) * m


def _apply_act(x, act):
    if act == "leaky":
        return jnp.where(x >= 0.0, x, 0.2 * x)
    if act == "relu":
        return jnp.maximum(x, 0.0)
    if act == "sigmoid":
        return 1.0 / (1.0 + jnp.exp(-x))
    return x  # 'none'


# ----------------------------------------------------------------------------
# Pallas kernel 1: tiled matmul with fused bias + activation epilogue.
#   A: [M, K] bf16, W: [K, Np] bf16 (pre-padded along N), bias: [1, Np] f32.
#   Accumulates directly into the VMEM-resident f32 output tile.
# ----------------------------------------------------------------------------
def _matmul_bias_act_kernel(a_ref, w_ref, bias_ref, o_ref, *, act):
    k = pl.program_id(2)

    @pl.when(k == 0)
    def _():
        o_ref[...] = jnp.zeros_like(o_ref)

    o_ref[...] += jnp.dot(a_ref[...], w_ref[...],
                          preferred_element_type=jnp.float32)

    @pl.when(k == pl.num_programs(2) - 1)
    def _():
        o_ref[...] = _apply_act(o_ref[...] + bias_ref[...], act)


def linear_fused(a, layer, act, tm_max=256):
    """a: [M, K] f32 -> act(a @ W + b): [M, N] f32 (bias/act fused in-kernel)."""
    M, K = a.shape
    assert K == layer["K"], (K, layer["K"])
    Kw, Np = layer["w"].shape
    assert Kw == K
    tk, tn = layer["tk"], layer["tn"]
    tm = min(tm_max, _round_up(M, 16))          # bf16 sublane packing = 16

    a_bf = a.astype(jnp.bfloat16)               # native MXU input dtype
    grid = (pl.cdiv(M, tm), Np // tn, pl.cdiv(K, tk))

    out = pl.pallas_call(
        functools.partial(_matmul_bias_act_kernel, act=act),
        out_shape=jax.ShapeDtypeStruct((M, Np), jnp.float32),
        grid_spec=pltpu.PrefetchScalarGridSpec(
            num_scalar_prefetch=0,
            grid=grid,
            in_specs=[
                pl.BlockSpec((tm, tk), lambda i, j, k: (i, k)),
                pl.BlockSpec((tk, tn), lambda i, j, k: (k, j)),
                pl.BlockSpec((1, tn), lambda i, j, k: (0, j)),
            ],
            out_specs=pl.BlockSpec((tm, tn), lambda i, j, k: (i, j)),
        ),
        compiler_params=pltpu.CompilerParams(
            dimension_semantics=("parallel", "parallel", "arbitrary")
        ),
    )(a_bf, layer["w"], layer["b"])

    if Np != layer["N"]:
        out = out[:, : layer["N"]]
    return out


# ----------------------------------------------------------------------------
# Pallas kernels 2+3: row-tiled BatchNorm (training mode, batch stats) + act.
#   Pass 1 accumulates per-channel sum / sum-of-squares over row tiles (padded
#   tail rows masked).  Pass 2 normalizes + applies activation per row tile.
#   gamma = 1, beta = 0 (PyTorch default init), eps = 1e-5.
# ----------------------------------------------------------------------------
def _bn_stats_kernel(x_ref, sum_ref, sq_ref, *, m_rows, tr):
    i = pl.program_id(0)

    @pl.when(i == 0)
    def _():
        sum_ref[...] = jnp.zeros_like(sum_ref)
        sq_ref[...] = jnp.zeros_like(sq_ref)

    x = x_ref[...]
    rows = jax.lax.broadcasted_iota(jnp.int32, x.shape, 0) + i * tr
    xm = jnp.where(rows < m_rows, x, 0.0)       # mask padded tail rows
    sum_ref[...] += jnp.sum(xm, axis=0, keepdims=True)
    sq_ref[...] += jnp.sum(xm * xm, axis=0, keepdims=True)


def _bn_apply_kernel(x_ref, sum_ref, sq_ref, o_ref, *, m_rows, act, eps=1e-5):
    inv_m = 1.0 / m_rows
    mean = sum_ref[...] * inv_m
    var = jnp.maximum(sq_ref[...] * inv_m - mean * mean, 0.0)
    o_ref[...] = _apply_act((x_ref[...] - mean) * jax.lax.rsqrt(var + eps), act)


def batchnorm_act(x, act, tr_max=512):
    """x: [M, C] f32 -> act(batchnorm(x)): [M, C] f32 (batch-statistics BN)."""
    # TODO(synk): running-mean/var buffer updates and affine/eval mode are
    # training-side bookkeeping and are not modeled (forward output matches).
    M, C = x.shape
    x = x.astype(jnp.float32)
    tr = min(tr_max, _round_up(M, 8))
    grid_r = pl.cdiv(M, tr)

    s_sum, s_sq = pl.pallas_call(
        functools.partial(_bn_stats_kernel, m_rows=M, tr=tr),
        out_shape=(jax.ShapeDtypeStruct((1, C), jnp.float32),
                   jax.ShapeDtypeStruct((1, C), jnp.float32)),
        grid_spec=pltpu.PrefetchScalarGridSpec(
            num_scalar_prefetch=0,
            grid=(grid_r,),
            in_specs=[pl.BlockSpec((tr, C), lambda i: (i, 0))],
            out_specs=[pl.BlockSpec((1, C), lambda i: (0, 0)),
                       pl.BlockSpec((1, C), lambda i: (0, 0))],
        ),
        compiler_params=pltpu.CompilerParams(dimension_semantics=("arbitrary",)),
    )(x)

    return pl.pallas_call(
        functools.partial(_bn_apply_kernel, m_rows=float(M), act=act),
        out_shape=jax.ShapeDtypeStruct((M, C), jnp.float32),
        grid_spec=pltpu.PrefetchScalarGridSpec(
            num_scalar_prefetch=0,
            grid=(grid_r,),
            in_specs=[pl.BlockSpec((tr, C), lambda i: (i, 0)),
                      pl.BlockSpec((1, C), lambda i: (0, 0)),
                      pl.BlockSpec((1, C), lambda i: (0, 0))],
            out_specs=pl.BlockSpec((tr, C), lambda i: (i, 0)),
        ),
        compiler_params=pltpu.CompilerParams(dimension_semantics=("parallel",)),
    )(x, s_sum, s_sq)


# ----------------------------------------------------------------------------
# Conv lowering glue: im2col (NHWC) — plain-JAX patch extraction.
# ----------------------------------------------------------------------------
def im2col(x_nhwc, k, stride, pad):
    """x: [B, H, W, C] -> ([B*oh*ow, k*k*C], oh, ow); feature order ((ki*k+kj)*C + c)."""
    B, H, W, C = x_nhwc.shape
    xp = jnp.pad(x_nhwc, ((0, 0), (pad, pad), (pad, pad), (0, 0)))
    Hp, Wp = H + 2 * pad, W + 2 * pad
    oh = (Hp - k) // stride + 1
    ow = (Wp - k) // stride + 1
    patches = []
    for i in range(k):
        for j in range(k):
            patches.append(
                xp[:, i: i + stride * oh: stride, j: j + stride * ow: stride, :]
            )
    cols = jnp.stack(patches, axis=3)            # [B, oh, ow, k*k, C]
    return cols.reshape(B * oh * ow, k * k * C), oh, ow


def conv_w_to_mat(w):
    """PyTorch conv weight [O, C, kh, kw] -> matmul weight [kh*kw*C, O]."""
    O, C, kh, kw = w.shape
    return w.transpose(2, 3, 1, 0).reshape(kh * kw * C, O)


def conv2d(x_nhwc, layer, k, stride, pad, post, act):
    """Conv2d via im2col + fused Pallas matmul; post in {'bias', 'bn'}."""
    B = x_nhwc.shape[0]
    cols, oh, ow = im2col(x_nhwc, k, stride, pad)
    if post == "bn":
        y = linear_fused(cols, layer, "none")    # conv bias fused (a no-op under BN)
        y = batchnorm_act(y, act)
    else:
        y = linear_fused(cols, layer, act)       # bias + act fused in matmul epilogue
    return y.reshape(B, oh, ow, -1)


def conv_transpose2d(x_nhwc, layer, k, stride, pad, post, act):
    """ConvTranspose2d via zero-insertion + stride-1 conv with pre-flipped kernel."""
    # TODO(synk): replace zero-insertion with stride^2 sub-pixel decomposition.
    B, H, W, C = x_nhwc.shape
    Hd, Wd = (H - 1) * stride + 1, (W - 1) * stride + 1
    xz = (jnp.zeros((B, Hd, Wd, C), x_nhwc.dtype)
          .at[:, ::stride, ::stride, :].set(x_nhwc))
    return conv2d(xz, layer, k, 1, k - 1 - pad, post, act)


# ----------------------------------------------------------------------------
# Model components (operate on prepared / pre-transformed params)
# ----------------------------------------------------------------------------
def generator_forward(prep, z, y):
    """z: [B, dim_z], y: [B, class_num] -> x: [B, 1, 28, 28] (NCHW)."""
    B = z.shape[0]
    h = jnp.concatenate([z, y], axis=1)                      # [B, dim_z+cls]
    h = linear_fused(h, prep["g_fc"], "none")                # [B, 3136]
    h = batchnorm_act(h, "relu")
    h = h.reshape(B, 7, 7, 64)                               # NHWC (weight pre-permuted)
    h = conv_transpose2d(h, prep["g_deconv1"], 4, 2, 1, "bn", "relu")       # [B,14,14,32]
    h = conv_transpose2d(h, prep["g_deconv2"], 4, 2, 1, "bias", "sigmoid")  # [B,28,28,1]
    return h.transpose(0, 3, 1, 2)                           # NCHW


def discriminator_forward(prep, x_nchw, y):
    """x: [B, 1, 28, 28] (NCHW), y: [B, class_num] -> [B, 1]."""
    B = x_nchw.shape[0]
    x = x_nchw.transpose(0, 2, 3, 1)                         # NHWC
    z = conv2d(x, prep["d_conv1"], 5, 1, 2, "bias", "leaky")                # [B,28,28,64]
    yb = jnp.broadcast_to(y[:, None, None, :], (B, 28, 28, y.shape[1]))
    z = jnp.concatenate([z, yb], axis=-1)                                   # [B,28,28,74]
    z = conv2d(z, prep["d_conv2"], 4, 2, 1, "bn", "leaky")                  # [B,14,14,128]
    z = conv2d(z, prep["d_conv3"], 4, 2, 1, "bn", "leaky")                  # [B,7,7,256]
    z = z.reshape(B, -1)                          # NHWC flatten (fc1 weight pre-permuted)
    z = linear_fused(z, prep["d_fc1"], "none")                              # [B,128]
    z = batchnorm_act(z, "leaky")
    z = linear_fused(z, prep["d_fc2"], "sigmoid")                           # [B,1]
    return z


def cgan_forward(prep, y, x=None, *, z_key, dim_z=10):
    """Mirrors cGAN.forward: with x -> (dis_real, dis_fake); else -> (z, x_gen)."""
    B = y.shape[0]
    z = jax.random.normal(z_key, (B, dim_z), jnp.float32)    # torch.randn equivalent
    if x is not None:
        dis_real = discriminator_forward(prep, x, y)
        x_fake = generator_forward(prep, z, y)
        dis_fake = discriminator_forward(prep, x_fake, y)
        return dis_real, dis_fake
    x_gen = generator_forward(prep, z, y)
    return z, x_gen


# ----------------------------------------------------------------------------
# Parameter init (matches cGAN.init_params) + one-time prep (transpose / flip /
# permute / pad / bf16-cast of all weights -- hoisted out of the hot path).
# ----------------------------------------------------------------------------
def init_params(key, dim_z=10, class_num=10, input_channel=1):
    keys = jax.random.split(key, 8)

    def uni(k, shape):
        fan = float(np.prod(shape[1:]))
        scale = 1.0 / math.sqrt(fan) / math.sqrt(3.0)
        return jax.random.uniform(k, shape, jnp.float32, -scale, scale)

    p = {}
    # Generator
    p["g_fc_w"] = uni(keys[0], (7 * 7 * 64, dim_z + class_num))   # Linear [out, in]
    p["g_fc_b"] = jnp.zeros((7 * 7 * 64,), jnp.float32)
    p["g_deconv1_w"] = uni(keys[1], (64, 32, 4, 4))               # [Cin, Cout, k, k]
    p["g_deconv1_b"] = jnp.zeros((32,), jnp.float32)
    p["g_deconv2_w"] = uni(keys[2], (32, 1, 4, 4))
    p["g_deconv2_b"] = jnp.zeros((1,), jnp.float32)
    # Discriminator
    p["d_conv1_w"] = uni(keys[3], (64, input_channel, 5, 5))      # [O, C, kh, kw]
    p["d_conv1_b"] = jnp.zeros((64,), jnp.float32)
    p["d_conv2_w"] = uni(keys[4], (128, 64 + class_num, 4, 4))
    p["d_conv2_b"] = jnp.zeros((128,), jnp.float32)
    p["d_conv3_w"] = uni(keys[5], (256, 128, 4, 4))
    p["d_conv3_b"] = jnp.zeros((256,), jnp.float32)
    p["d_fc1_w"] = uni(keys[6], (128, 7 * 7 * 256))
    p["d_fc1_b"] = jnp.zeros((128,), jnp.float32)
    p["d_fc2_w"] = uni(keys[7], (1, 128))
    p["d_fc2_b"] = jnp.zeros((1,), jnp.float32)
    return p


def _prep_matmul_layer(w_mat, bias):
    """w_mat: [K, N] f32, bias: [N] -> bf16 weight padded along N + tile sizes."""
    K, N = w_mat.shape
    if K % 128 == 0:
        tk = 256 if K % 256 == 0 else 128         # pipelined K reduction
    else:
        tk = K                                    # ragged K: single full-K block, no padding
    tn = 256 if N > 128 else 128
    Np = _round_up(N, tn)
    wp = jnp.zeros((K, Np), jnp.bfloat16).at[:, :N].set(w_mat.astype(jnp.bfloat16))
    bp = jnp.zeros((1, Np), jnp.float32).at[0, :N].set(bias.astype(jnp.float32))
    return {"w": wp, "b": bp, "K": K, "N": N, "tk": tk, "tn": tn}


def prepare_params(p):
    prep = {}
    # g_fc: permute output features (c,h,w)->(h,w,c) so fc output is NHWC-flat.
    w = p["g_fc_w"].reshape(64, 7, 7, -1).transpose(1, 2, 0, 3).reshape(3136, -1)
    b = p["g_fc_b"].reshape(64, 7, 7).transpose(1, 2, 0).reshape(3136)
    prep["g_fc"] = _prep_matmul_layer(w.T, b)
    # deconvs: spatial flip + [Cin,Cout,k,k]->[Cout,Cin,k,k] -> matmul layout.
    for name in ("g_deconv1", "g_deconv2"):
        wt = p[name + "_w"]
        wc = jnp.flip(wt, axis=(2, 3)).transpose(1, 0, 2, 3)
        prep[name] = _prep_matmul_layer(conv_w_to_mat(wc), p[name + "_b"])
    # convs
    for name in ("d_conv1", "d_conv2", "d_conv3"):
        prep[name] = _prep_matmul_layer(conv_w_to_mat(p[name + "_w"]), p[name + "_b"])
    # d_fc1: permute input features (c,h,w)->(h,w,c) so NHWC flatten feeds it directly.
    w = p["d_fc1_w"].reshape(-1, 256, 7, 7).transpose(0, 2, 3, 1).reshape(-1, 12544)
    prep["d_fc1"] = _prep_matmul_layer(w.T, p["d_fc1_b"])
    prep["d_fc2"] = _prep_matmul_layer(p["d_fc2_w"].T, p["d_fc2_b"])
    return prep


# ----------------------------------------------------------------------------
if __name__ == "__main__":
    key = jax.random.PRNGKey(0)
    k_params, k_x, k_y, k_z = jax.random.split(key, 4)

    B, DIM_Z, CLASS_NUM = 2, 10, 10  # spatial 28x28 is hard-wired by the module
    params = init_params(k_params, dim_z=DIM_Z, class_num=CLASS_NUM, input_channel=1)
    prep = prepare_params(params)    # one-time weight transform (off the hot path)

    labels = jax.random.randint(k_y, (B,), 0, CLASS_NUM)
    y = jax.nn.one_hot(labels, CLASS_NUM, dtype=jnp.float32)        # [B, 10]
    x = jax.random.normal(k_x, (B, 1, 28, 28), jnp.float32)         # NCHW, like PyTorch

    # Branch with x: returns (dis_output_real, dis_output_fake)
    dis_real, dis_fake = cgan_forward(prep, y, x, z_key=k_z, dim_z=DIM_Z)
    dis_real, dis_fake = jax.block_until_ready((dis_real, dis_fake))

    # Branch without x: returns (z, x_gen)
    z_out, x_gen = cgan_forward(prep, y, None, z_key=k_z, dim_z=DIM_Z)
    z_out, x_gen = jax.block_until_ready((z_out, x_gen))

    assert dis_real.shape == (B, 1) and dis_fake.shape == (B, 1)
    assert z_out.shape == (B, DIM_Z) and x_gen.shape == (B, 1, 28, 28)
    assert bool(jnp.all((dis_real >= 0) & (dis_real <= 1)))
    assert bool(jnp.all((x_gen >= 0) & (x_gen <= 1)))
    assert bool(jnp.all(jnp.isfinite(dis_real)))
    assert bool(jnp.all(jnp.isfinite(x_gen)))
    print("KERNEL_OK")
</pallas_src>

<mosaic_0001>
module attributes {stable_mosaic.version = 11 : i64} {
  func.func @_matmul_bias_act_kernel(%arg0: i32, %arg1: i32, %arg2: i32, %arg3: memref<256x25xbf16, #tpu.memory_space<vmem>>, %arg4: memref<25x128xbf16, #tpu.memory_space<vmem>>, %arg5: memref<1x128xf32, #tpu.memory_space<vmem>>, %arg6: memref<256x128xf32, #tpu.memory_space<vmem>>) attributes {dimension_semantics = [#tpu.dimension_semantics<parallel>, #tpu.dimension_semantics<parallel>, #tpu.dimension_semantics<arbitrary>], iteration_bounds = array<i64: 7, 1, 1>, scalar_prefetch = 0 : i64, scratch_operands = 0 : i64, tpu.core_type = #tpu.core_type<tc>, window_params = [{transform_indices = @transform_0, window_bounds = array<i64: 256, 25>}, {transform_indices = @transform_1, window_bounds = array<i64: 25, 128>}, {transform_indices = @transform_2, window_bounds = array<i64: 1, 128>}, {transform_indices = @transform_3, window_bounds = array<i64: 256, 128>}]} {
    %c0_i32 = arith.constant 0 : i32
    %0 = arith.cmpi eq, %arg2, %c0_i32 : i32
    %1 = arith.extui %0 : i1 to i32
    %c0_i32_0 = arith.constant 0 : i32
    %2 = arith.cmpi ne, %1, %c0_i32_0 : i32
    scf.if %2 {
      %cst_10 = arith.constant 0.000000e+00 : f32
      %12 = vector.broadcast %cst_10 : f32 to vector<256x128xf32>
      %c0_11 = arith.constant 0 : index
      %c0_12 = arith.constant 0 : index
      %13 = vector.load %arg6[%c0_11, %c0_12] : memref<256x128xf32, #tpu.memory_space<vmem>>, vector<256x128xf32>
      tpu.vector_store %arg6[%c0_11, %c0_12], %12 {strides = array<i32>} : memref<256x128xf32, #tpu.memory_space<vmem>>, vector<256x128xf32>,
    } else {
    }
    %c0 = arith.constant 0 : index
    %c0_1 = arith.constant 0 : index
    %3 = vector.load %arg6[%c0, %c0_1] : memref<256x128xf32, #tpu.memory_space<vmem>>, vector<256x128xf32>
    %c0_2 = arith.constant 0 : index
    %c0_3 = arith.constant 0 : index
    %4 = vector.load %arg3[%c0_2, %c0_3] : memref<256x25xbf16, #tpu.memory_space<vmem>>, vector<256x25xbf16>
    %c0_4 = arith.constant 0 : index
    %c0_5 = arith.constant 0 : index
    %5 = vector.load %arg4[%c0_4, %c0_5] : memref<25x128xbf16, #tpu.memory_space<vmem>>, vector<25x128xbf16>
    %cst = arith.constant dense<0.000000e+00> : vector<256x128xf32>
    %6 = tpu.matmul %4, %5, %cst {dimension_numbers = #tpu.dot_dimension_numbers<[1], [0], [0], [1], [0, 0, 1, 1], [], []>} : vector<256x25xbf16>, vector<25x128xbf16>, vector<256x128xf32> -> vector<256x128xf32>
    %7 = arith.addf %3, %6 : vector<256x128xf32>
    %c0_6 = arith.constant 0 : index
    %c0_7 = arith.constant 0 : index
    %8 = vector.load %arg6[%c0_6, %c0_7] : memref<256x128xf32, #tpu.memory_space<vmem>>, vector<256x128xf32>
    tpu.vector_store %arg6[%c0_6, %c0_7], %7 {strides = array<i32>} : memref<256x128xf32, #tpu.memory_space<vmem>>, vector<256x128xf32>,
    %c0_i32_8 = arith.constant 0 : i32
    %9 = arith.cmpi eq, %arg2, %c0_i32_8 : i32
    %10 = arith.extui %9 : i1 to i32
    %c0_i32_9 = arith.constant 0 : i32
    %11 = arith.cmpi ne, %10, %c0_i32_9 : i32
    scf.if %11 {
      %c0_10 = arith.constant 0 : index
      %c0_11 = arith.constant 0 : index
      %12 = vector.load %arg6[%c0_10, %c0_11] : memref<256x128xf32, #tpu.memory_space<vmem>>, vector<256x128xf32>
      %c0_12 = arith.constant 0 : index
      %c0_13 = arith.constant 0 : index
      %13 = vector.load %arg5[%c0_12, %c0_13] : memref<1x128xf32, #tpu.memory_space<vmem>>, vector<1x128xf32>
      %14 = vector.broadcast %13 : vector<1x128xf32> to vector<256x128xf32>
      %15 = arith.addf %12, %14 : vector<256x128xf32>
      %cst_14 = arith.constant 0.000000e+00 : f32
      %16 = vector.broadcast %cst_14 : f32 to vector<256x128xf32>
      %17 = arith.cmpf oge, %15, %16 : vector<256x128xf32>
      %cst_15 = arith.constant 2.000000e-01 : f32
      %18 = vector.broadcast %cst_15 : f32 to vector<256x128xf32>
      %19 = arith.mulf %18, %15 : vector<256x128xf32>
      %20 = arith.select %17, %15, %19 : vector<256x128xi1>, vector<256x128xf32>
      %c0_16 = arith.constant 0 : index
      %c0_17 = arith.constant 0 : index
      %21 = vector.load %arg6[%c0_16, %c0_17] : memref<256x128xf32, #tpu.memory_space<vmem>>, vector<256x128xf32>
      tpu.vector_store %arg6[%c0_16, %c0_17], %20 {strides = array<i32>} : memref<256x128xf32, #tpu.memory_space<vmem>>, vector<256x128xf32>,
    } else {
    }
    return
  }
  func.func @transform_0(%arg0: i32, %arg1: i32, %arg2: i32) -> (i32, i32) {
    %c0_i32 = arith.constant 0 : i32
    return %arg0, %arg2 : i32, i32
  }
  func.func @transform_1(%arg0: i32, %arg1: i32, %arg2: i32) -> (i32, i32) {
    %c0_i32 = arith.constant 0 : i32
    return %arg2, %arg1 : i32, i32
  }
  func.func @transform_2(%arg0: i32, %arg1: i32, %arg2: i32) -> (i32, i32) {
    %c0_i32 = arith.constant 0 : i32
    %c0_i32_0 = arith.constant 0 : i32
    return %c0_i32, %arg1 : i32, i32
  }
  func.func @transform_3(%arg0: i32, %arg1: i32, %arg2: i32) -> (i32, i32) {
    %c0_i32 = arith.constant 0 : i32
    return %arg0, %arg1 : i32, i32
  }
}

</mosaic_0001>

<bundles_post_ra>
// kernel: tpu_custom_call.1
= control target key start
LH: loop header
LB: loop body
LE: loop exit
PB: predicated region body
PF: predicated region fallthrough
CT: control target
= control target key end

     0   :  { %8 = vsyncpa [#allocation3], 0  ;;  %s1621_s0 = inlined_call_operand.vmem [shape: bf16[1568,25], index: 0, kind: input, shape index: {}]   ;;  %s1622_s1 = inlined_call_operand.vmem [shape: bf16[25,128], index: 1, kind: input, shape index: {}]   ;;  %s1623_s2 = inlined_call_operand.vmem [shape: f32[1,128], index: 2, kind: input, shape index: {}]   ;;  %s1624_s3 = inlined_call_operand.hbm [shape: f32[1568,128], index: 3, kind: output, shape index: {}]  }
   0x1   :  { %10 = vsyncpa [#allocation3 + $0x1], 0  ;;  %s1376_s12 = smov 0   ;;  %s1378_s13 = smov 0  }
   0x2   :  { %s1380_s14 = smov 0   ;;  %s1382_s15 = smov 0  }
   0x3   :  { %s1384_s16 = smov 0   ;;  %s1386_s17 = smov 0  }
   0x4 LB: > { %s1083_s18 = sadd.s32 4294967295, %s1350_s17   ;;  %s1084_s19 = sadd.s32 4294967294, %s1350_s17   ;;  %s1350_s17 = sphi %s1386_s17, %s16_s17   ;;  %s1346_s16 = sphi %s1384_s16, %s1631_s16   ;;  %s1342_s15 = sphi %s1382_s15, %s1630_s15   ;;  %s1338_s14 = sphi %s1380_s14, %s1629_s14   ;;  %s1334_s13 = sphi %s1378_s13, %s1628_s13   ;;  %s1330_s12 = sphi %s1376_s12, %s1627_s12  }
   0x5   : > { %s35_s20 = sadd.s32 1, %s1346_s16  ;;  %s126_s21 = sadd.s32 1, %s1338_s14 }
   0x6   : > { %p37_p0 = scmp.ge.s32.totalorder %s35_s20, 7  ;;  %p136_p1 = scmp.ne.s32.totalorder %s1338_s14, %s1334_s13 }
   0x7   : > { %p137_p2 = scmp.eq.s32.totalorder %s1083_s18, 6  ;;  %p142_p3 = scmp.ne.s32.totalorder %s1334_s13, %s1330_s12 }
   0x8   : > { %s1633_s20 = smov (%p37_p0, %s35_s20), 0  ;;  %p143_p5 = scmp.eq.s32.totalorder %s1084_s19, 6 }
   0x9   : > { %p1416_p4 = por %p137_p2, %p136_p1  ;;  %s121_s23 = ssub.s32 %s1346_s16, %s1633_s20 }
   0xa   : > { %p1089_p6 = scmp.ge.s32.totalorder %s1350_s17, 1  ;;  %p124_p7 = scmp.eq.s32.totalorder %s121_s23, 0 }
   0xb   : > { %p1423_p8 = por %p143_p5, %p142_p3  ;;  %p199_p9 = scmp.lt.s32.totalorder %s1350_s17, 8 }
   0xc   : > { %s1429_s25 = scalar_select %p124_p7, %s1338_s14, %s126_s21  }
   0xd   : > { %p200_p10 = pnand %p1089_p6, %p199_p9 }
   0xe   : > { %v1254_v0 = vld [vmem:[%s1622_s1] sm:$0xff] (!%p200_p10)   ;;  %vm520_vm0 = vcmask (!%p200_p10), 1043456   ;;  %v1255_v1 = vld [vmem:[%s1622_s1 + $0x8] sm:$0x1f] (!%p200_p10)   ;;  %vm521_vm1 = vcmask (!%p200_p10), 1044480   ;;  %s1438_s30 = sshll.u32 (!%p200_p10), %s1342_s15, 5 }
   0xf   : > { %203 = sbr.rel (%p200_p10) target bundleno = 305 (0x131), region = 32  ;;  %1156 = vmatprep.subr.bf16.mxu0 (!%p200_p10), %v1254_v0  ;;  %1192 = vmatprep.subr.bf16.mxu1 (!%p200_p10), %v1254_v0  ;;  %v1352_v2 = vmov (!%p200_p10), 65535   ;;  %p246_p11 = scmp.lt.s32.totalorder (!%p200_p10), %s1438_s30, 195  ;;  %vm471_vm2 = vcmask (!%p200_p10), 203776   ;;  %v1483_v23 = vld [vmem:[%s1623_s2] ss:$0 sm:$0xff] (!%p200_p10) }
  0x10   : > { %1157 = vmatpush3.bf16.msra.mxu0 (!%p200_p10), %v1254_v0  ;;  %1194 = vmatpush3.bf16.msra.mxu1 (!%p200_p10), %v1254_v0  ;;  %v522_v3 = vsel (!%p200_p10), %vm520_vm0, 4294967295, %v1352_v2  ;;  %s238_s9 = sand.u32 (!%p200_p10), 1, %s1334_s13  }
  0x11   : > { %v523_v4 = vsel (!%p200_p10), %vm521_vm1, %v522_v3, 0  ;;  %s1090_s18 = sshll.u32 (!%p200_p10), %s238_s9, 8  ;;  %s1555_s21 = scalar_lea.sflag (!%p200_p10), [#allocation3], %s238_s9 }
  0x12   : > { %v525_v5 = vand.u32 (!%p200_p10), %v1255_v1, %v523_v4  ;;  %s1492_s19 = scalar_lea.vmem (!%p200_p10), [#allocation2], %s1090_s18 }
  0x14   : > { %1158 = vmatprep.subr.bf16.mxu0 (!%p200_p10), %v525_v5  ;;  %1193 = vmatprep.subr.bf16.mxu1 (!%p200_p10), %v525_v5 }
  0x15   : > { %1159 = vmatpush3.bf16.msra.mxu0 (!%p200_p10), %v525_v5  ;;  %1195 = vmatpush3.bf16.msra.mxu1 (!%p200_p10), %v525_v5 }
  0x16   : > { %s247_s4 = scalar_select %p246_p11, %s1438_s30, 195 }
  0x17   : > { %s963_s23 = ssub.s32 (%p1416_p4), 196, %s1438_s30 }
  0x18   : > { %s1092_s5 = sshll.u32 %s247_s4, 2  ;;  %p964_p12 = scmp.lt.s32.totalorder (%p1416_p4), %s963_s23, 32 }
  0x19   : > { %s1445_s8 = scalar_lea.vmem %s1621_s0, %s1092_s5 }
  0x1a   : > { %v1256_v6 = vld [vmem:[%s1445_s8] sm:$0xff]   ;;  %v1258_v8 = vld [vmem:[%s1445_s8 + $0x8] sm:$0xff]   ;;  %v1260_v10 = vld [vmem:[%s1445_s8 + $0x10] sm:$0xff]  }
  0x1b   : > { %v1257_v7 = vld [vmem:[%s1445_s8 + $0x40] sm:$0xff]   ;;  %1160 = vmatprep.mubr.msk.bf16.mxu0 %vm471_vm2, %v1256_v6  ;;  %v1259_v9 = vld [vmem:[%s1445_s8 + $0x48] sm:$0xff]   ;;  %v1261_v11 = vld [vmem:[%s1445_s8 + $0x50] sm:$0xff]  }
  0x1c   : > { %1176 = vmatprep.mubr.msk.bf16.mxu1 %vm471_vm2, %v1257_v7  ;;  %1161 = vmatmul.mubr.msk.bf16.vlgmr.msra.gmra.mrb[0].mxu0 %vm471_vm2, %v1258_v8  ;;  %v1262_v12 = vld [vmem:[%s1445_s8 + $0x18] sm:$0xff]   ;;  %v1264_v14 = vld [vmem:[%s1445_s8 + $0x20] sm:$0xff]   ;;  %v1266_v16 = vld [vmem:[%s1445_s8 + $0x28] sm:$0xff]  }
  0x1d   : > { %1177 = vmatmul.mubr.msk.bf16.vlgmr.msra.gmra.mrb[0].mxu1 %vm471_vm2, %v1259_v9  ;;  %1164 = vmatprep.mubr.msk.bf16.mxu0 %vm471_vm2, %v1260_v10  ;;  %v1263_v13 = vld [vmem:[%s1445_s8 + $0x58] sm:$0xff]   ;;  %v1265_v15 = vld [vmem:[%s1445_s8 + $0x60] sm:$0xff]   ;;  %v1267_v17 = vld [vmem:[%s1445_s8 + $0x68] sm:$0xff]  }
  0x1e   : > { %1180 = vmatprep.mubr.msk.bf16.mxu1 %vm471_vm2, %v1261_v11  ;;  %v1268_v18 = vld [vmem:[%s1445_s8 + $0x30] sm:$0xff]   ;;  %v1270_v20 = vld [vmem:[%s1445_s8 + $0x38] sm:$0xff]  }
  0x1f   : > { %v1269_v19 = vld [vmem:[%s1445_s8 + $0x70] sm:$0xff]   ;;  %v1271_v21 = vld [vmem:[%s1445_s8 + $0x78] sm:$0xff]  }
  0x24   : > { %1165 = vmatmul.mubr.msk.bf16.gmra.mrb[4].mxu0 %vm471_vm2, %v1262_v12 }
  0x25   : > { %1181 = vmatmul.mubr.msk.bf16.gmra.mrb[4].mxu1 %vm471_vm2, %v1263_v13  ;;  %1168 = vmatprep.mubr.msk.bf16.mxu0 %vm471_vm2, %v1264_v14 }
  0x26   : > { %1184 = vmatprep.mubr.msk.bf16.mxu1 %vm471_vm2, %v1265_v15 }
  0x2c   : > { %1169 = vmatmul.mubr.msk.bf16.gmra.mrb[8].mxu0 %vm471_vm2, %v1266_v16 }
  0x2d   : > { %1185 = vmatmul.mubr.msk.bf16.gmra.mrb[8].mxu1 %vm471_vm2, %v1267_v17  ;;  %1172 = vmatprep.mubr.msk.bf16.mxu0 %vm471_vm2, %v1268_v18 }
  0x2e   : > { %1188 = vmatprep.mubr.msk.bf16.mxu1 %vm471_vm2, %v1269_v19 }
  0x34   : > { %1173 = vmatmul.mubr.msk.bf16.gmra.mrb[12].mxu0 %vm471_vm2, %v1270_v20 }
  0x35   : > { %1189 = vmatmul.mubr.msk.bf16.gmra.mrb[12].mxu1 %vm471_vm2, %v1271_v21 }
  0xef   : > { %v1162_v22 = vpop.f32.mrb[0].mxu0 }
  0xf0   : > { %v1178_v24 = vpop.f32.mrb[0].mxu1  ;;  %v561_v25 = vpop.f32.mrb[1].mxu0  ;;  %v796_v28 = vadd.f32 %v1162_v22, %v1483_v23 }
  0xf1   : > { %v625_v26 = vpop.f32.mrb[1].mxu1  ;;  %v1163_v27 = vpop.f32.mrb[2].mxu0  ;;  %v812_v31 = vadd.f32 %v1178_v24, %v1483_v23  ;;  %v794_v32 = vadd.f32 %v1483_v23, %v561_v25 }
  0xf2   : > { %v1179_v29 = vpop.f32.mrb[2].mxu1  ;;  %v564_v30 = vpop.f32.mrb[3].mxu0  ;;  %vm828_vm3 = vcmp.ge.f32.partialorder %v796_v28, 0.0  ;;  %v860_v34 = vmul.f32 0.2, %v796_v28  ;;  %v810_v35 = vadd.f32 %v1483_v23, %v625_v26  ;;  %v797_v36 = vadd.f32 %v1163_v27, %v1483_v23 }
  0xf3   : > { %v628_v33 = vpop.f32.mrb[3].mxu1  ;;  %vm844_vm4 = vcmp.ge.f32.partialorder %v812_v31, 0.0  ;;  %v876_v37 = vmul.f32 0.2, %v812_v31  ;;  %vm826_vm5 = vcmp.ge.f32.partialorder %v794_v32, 0.0  ;;  %v813_v44 = vadd.f32 %v1179_v29, %v1483_v23 }
  0xf4   : > { %v858_v38 = vmul.f32 0.2, %v794_v32  ;;  %v892_v39 = vsel %vm828_vm3, %v796_v28, %v860_v34  ;;  %vm842_vm6 = vcmp.ge.f32.partialorder %v810_v35, 0.0  ;;  %v874_v40 = vmul.f32 0.2, %v810_v35 }
  0xf5   : > { %vm829_vm7 = vcmp.ge.f32.partialorder %v797_v36, 0.0  ;;  %924 = vst [vmem:[%s1492_s19 + $0x10] sm:$0xff] %v892_v39  ;;  %v908_v41 = vsel %vm844_vm4, %v812_v31, %v876_v37  ;;  %v861_v43 = vmul.f32 0.2, %v797_v36  ;;  %v795_v47 = vadd.f32 %v1483_v23, %v564_v30 }
  0xf6   : > { %v890_v42 = vsel %vm826_vm5, %v794_v32, %v858_v38  ;;  %940 = vst [vmem:[%s1492_s19 + $0x90] sm:$0xff] %v908_v41  ;;  %v906_v46 = vsel %vm842_vm6, %v810_v35, %v874_v40  ;;  %vm845_vm8 = vcmp.ge.f32.partialorder %v813_v44, 0.0  ;;  %v877_v51 = vmul.f32 0.2, %v813_v44 }
  0xf7   : > { %v1166_v45 = vpop.f32.mrb[4].mxu0  ;;  %922 = vst [vmem:[%s1492_s19] sm:$0xff] %v890_v42  ;;  %938 = vst [vmem:[%s1492_s19 + $0x80] sm:$0xff] %v906_v46  ;;  %v893_v50 = vsel %vm829_vm7, %v797_v36, %v861_v43  ;;  %vm827_vm9 = vcmp.ge.f32.partialorder %v795_v47, 0.0  ;;  %v859_v54 = vmul.f32 0.2, %v795_v47  ;;  %v811_v55 = vadd.f32 %v1483_v23, %v628_v33 }
  0xf8   : > { %v1182_v48 = vpop.f32.mrb[4].mxu1  ;;  %v577_v49 = vpop.f32.mrb[5].mxu0  ;;  %925 = vst [vmem:[%s1492_s19 + $0x18] sm:$0xff] %v893_v50  ;;  %v800_v56 = vadd.f32 %v1166_v45, %v1483_v23  ;;  %v909_v59 = vsel %vm845_vm8, %v813_v44, %v877_v51 }
  0xf9   : > { %v641_v52 = vpop.f32.mrb[5].mxu1  ;;  %v1167_v53 = vpop.f32.mrb[6].mxu0  ;;  %v816_v60 = vadd.f32 %v1182_v48, %v1483_v23  ;;  %941 = vst [vmem:[%s1492_s19 + $0x98] sm:$0xff] %v909_v59  ;;  %v891_v62 = vsel %vm827_vm9, %v795_v47, %v859_v54  ;;  %vm843_vm10 = vcmp.ge.f32.partialorder %v811_v55, 0.0  ;;  %v875_v63 = vmul.f32 0.2, %v811_v55 }
  0xfa   : > { %v1183_v57 = vpop.f32.mrb[6].mxu1  ;;  %v580_v58 = vpop.f32.mrb[7].mxu0  ;;  %vm832_vm11 = vcmp.ge.f32.partialorder %v800_v56, 0.0  ;;  %923 = vst [vmem:[%s1492_s19 + $0x8] sm:$0xff] %v891_v62  ;;  %v864_v0 = vmul.f32 0.2, %v800_v56  ;;  %v798_v2 = vadd.f32 %v1483_v23, %v577_v49  ;;  %v814_v4 = vadd.f32 %v1483_v23, %v641_v52 }
  0xfb   : > { %v644_v61 = vpop.f32.mrb[7].mxu1  ;;  %vm848_vm12 = vcmp.ge.f32.partialorder %v816_v60, 0.0  ;;  %v880_v1 = vmul.f32 0.2, %v816_v60  ;;  %v907_v3 = vsel %vm843_vm10, %v811_v55, %v875_v63  ;;  %v801_v10 = vadd.f32 %v1167_v53, %v1483_v23 }
  0xfc   : > { %939 = vst [vmem:[%s1492_s19 + $0x88] sm:$0xff] %v907_v3  ;;  %v896_v5 = vsel %vm832_vm11, %v800_v56, %v864_v0  ;;  %vm830_vm13 = vcmp.ge.f32.partialorder %v798_v2, 0.0  ;;  %v862_v7 = vmul.f32 0.2, %v798_v2  ;;  %vm846_vm14 = vcmp.ge.f32.partialorder %v814_v4, 0.0 }
  0xfd   : > { %v912_v6 = vsel %vm848_vm12, %v816_v60, %v880_v1  ;;  %928 = vst [vmem:[%s1492_s19 + $0x30] sm:$0xff] %v896_v5  ;;  %v878_v9 = vmul.f32 0.2, %v814_v4  ;;  %v817_v11 = vadd.f32 %v1183_v57, %v1483_v23  ;;  %vm833_vm15 = vcmp.ge.f32.partialorder %v801_v10, 0.0 }
  0xfe   : > { %944 = vst [vmem:[%s1492_s19 + $0xb0] sm:$0xff] %v912_v6  ;;  %v894_v14 = vsel %vm830_vm13, %v798_v2, %v862_v7  ;;  %v865_v18 = vmul.f32 0.2, %v801_v10  ;;  %v799_v22 = vadd.f32 %v1483_v23, %v580_v58  ;;  %v815_v24 = vadd.f32 %v1483_v23, %v644_v61 }
  0xff   : > { %v1170_v8 = vpop.f32.mrb[8].mxu0  ;;  %926 = vst [vmem:[%s1492_s19 + $0x20] sm:$0xff] %v894_v14  ;;  %v910_v17 = vsel %vm846_vm14, %v814_v4, %v878_v9  ;;  %vm849_vm0 = vcmp.ge.f32.partialorder %v817_v11, 0.0  ;;  %v881_v21 = vmul.f32 0.2, %v817_v11 }
 0x100   : > { %v1186_v12 = vpop.f32.mrb[8].mxu1  ;;  %v593_v13 = vpop.f32.mrb[9].mxu0  ;;  %942 = vst [vmem:[%s1492_s19 + $0xa0] sm:$0xff] %v910_v17  ;;  %v804_v25 = vadd.f32 %v1170_v8, %v1483_v23  ;;  %v897_v27 = vsel %vm833_vm15, %v801_v10, %v865_v18  ;;  %vm831_vm1 = vcmp.ge.f32.partialorder %v799_v22, 0.0  ;;  %v863_v29 = vmul.f32 0.2, %v799_v22 }
 0x101   : > { %v657_v15 = vpop.f32.mrb[9].mxu1  ;;  %v1171_v16 = vpop.f32.mrb[10].mxu0  ;;  %929 = vst [vmem:[%s1492_s19 + $0x38] sm:$0xff] %v897_v27  ;;  %v913_v28 = vsel %vm849_vm0, %v817_v11, %v881_v21  ;;  %vm847_vm2 = vcmp.ge.f32.partialorder %v815_v24, 0.0  ;;  %v879_v30 = vmul.f32 0.2, %v815_v24  ;;  %v820_v32 = vadd.f32 %v1186_v12, %v1483_v23 }
 0x102   : > { %v1187_v19 = vpop.f32.mrb[10].mxu1  ;;  %v596_v20 = vpop.f32.mrb[11].mxu0  ;;  %945 = vst [vmem:[%s1492_s19 + $0xb8] sm:$0xff] %v913_v28  ;;  %vm836_vm3 = vcmp.ge.f32.partialorder %v804_v25, 0.0  ;;  %v868_v31 = vmul.f32 0.2, %v804_v25  ;;  %v895_v33 = vsel %vm831_vm1, %v799_v22, %v863_v29  ;;  %v802_v34 = vadd.f32 %v1483_v23, %v593_v13 }
 0x103   : > { %v660_v26 = vpop.f32.mrb[11].mxu1  ;;  %v818_v35 = vadd.f32 %v1483_v23, %v657_v15  ;;  %927 = vst [vmem:[%s1492_s19 + $0x28] sm:$0xff] %v895_v33  ;;  %v911_v37 = vsel %vm847_vm2, %v815_v24, %v879_v30  ;;  %vm852_vm4 = vcmp.ge.f32.partialorder %v820_v32, 0.0  ;;  %v884_v39 = vmul.f32 0.2, %v820_v32 }
 0x104   : > { %v900_v38 = vsel %vm836_vm3, %v804_v25, %v868_v31  ;;  %943 = vst [vmem:[%s1492_s19 + $0xa8] sm:$0xff] %v911_v37  ;;  %vm834_vm5 = vcmp.ge.f32.partialorder %v802_v34, 0.0  ;;  %v866_v42 = vmul.f32 0.2, %v802_v34  ;;  %v805_v45 = vadd.f32 %v1171_v16, %v1483_v23 }
 0x105   : > { %932 = vst [vmem:[%s1492_s19 + $0x50] sm:$0xff] %v900_v38  ;;  %vm850_vm6 = vcmp.ge.f32.partialorder %v818_v35, 0.0  ;;  %v882_v43 = vmul.f32 0.2, %v818_v35  ;;  %v916_v44 = vsel %vm852_vm4, %v820_v32, %v884_v39  ;;  %v821_v53 = vadd.f32 %v1187_v19, %v1483_v23 }
 0x106   : > { %948 = vst [vmem:[%s1492_s19 + $0xd0] sm:$0xff] %v916_v44  ;;  %v898_v48 = vsel %vm834_vm5, %v802_v34, %v866_v42  ;;  %vm837_vm7 = vcmp.ge.f32.partialorder %v805_v45, 0.0  ;;  %v869_v52 = vmul.f32 0.2, %v805_v45  ;;  %v803_v54 = vadd.f32 %v1483_v23, %v596_v20 }
 0x107   : > { %v1174_v36 = vpop.f32.mrb[12].mxu0  ;;  %v914_v49 = vsel %vm850_vm6, %v818_v35, %v882_v43  ;;  %930 = vst [vmem:[%s1492_s19 + $0x40] sm:$0xff] %v898_v48  ;;  %v819_v56 = vadd.f32 %v1483_v23, %v660_v26  ;;  %vm853_vm8 = vcmp.ge.f32.partialorder %v821_v53, 0.0  ;;  %v885_v59 = vmul.f32 0.2, %v821_v53 }
 0x108   : > { %v1190_v40 = vpop.f32.mrb[12].mxu1  ;;  %v609_v41 = vpop.f32.mrb[13].mxu0  ;;  %946 = vst [vmem:[%s1492_s19 + $0xc0] sm:$0xff] %v914_v49  ;;  %v808_v57 = vadd.f32 %v1174_v36, %v1483_v23  ;;  %v901_v58 = vsel %vm837_vm7, %v805_v45, %v869_v52  ;;  %vm835_vm9 = vcmp.ge.f32.partialorder %v803_v54, 0.0  ;;  %v867_v60 = vmul.f32 0.2, %v803_v54 }
 0x109   : > { %v673_v46 = vpop.f32.mrb[13].mxu1  ;;  %v1175_v47 = vpop.f32.mrb[14].mxu0  ;;  %933 = vst [vmem:[%s1492_s19 + $0x58] sm:$0xff] %v901_v58  ;;  %vm851_vm10 = vcmp.ge.f32.partialorder %v819_v56, 0.0  ;;  %v883_v61 = vmul.f32 0.2, %v819_v56  ;;  %v917_v62 = vsel %vm853_vm8, %v821_v53, %v885_v59  ;;  %v824_v0 = vadd.f32 %v1190_v40, %v1483_v23 }
 0x10a   : > { %v1191_v50 = vpop.f32.mrb[14].mxu1  ;;  %v612_v51 = vpop.f32.mrb[15].mxu0  ;;  %vm840_vm11 = vcmp.ge.f32.partialorder %v808_v57, 0.0  ;;  %v872_v63 = vmul.f32 0.2, %v808_v57  ;;  %v806_v1 = vadd.f32 %v1483_v23, %v609_v41  ;;  %949 = vst [vmem:[%s1492_s19 + $0xd8] sm:$0xff] %v917_v62  ;;  %v899_v2 = vsel %vm835_vm9, %v803_v54, %v867_v60 }
 0x10b   : > { %v676_v55 = vpop.f32.mrb[15].mxu1  ;;  %v915_v3 = vsel %vm851_vm10, %v819_v56, %v883_v61  ;;  %931 = vst [vmem:[%s1492_s19 + $0x48] sm:$0xff] %v899_v2  ;;  %vm856_vm12 = vcmp.ge.f32.partialorder %v824_v0, 0.0  ;;  %v888_v5 = vmul.f32 0.2, %v824_v0  ;;  %v822_v7 = vadd.f32 %v1483_v23, %v673_v46 }
 0x10c   : > { %947 = vst [vmem:[%s1492_s19 + $0xc8] sm:$0xff] %v915_v3  ;;  %v904_v4 = vsel %vm840_vm11, %v808_v57, %v872_v63  ;;  %vm838_vm13 = vcmp.ge.f32.partialorder %v806_v1, 0.0  ;;  %v870_v6 = vmul.f32 0.2, %v806_v1  ;;  %v809_v8 = vadd.f32 %v1175_v47, %v1483_v23 }
 0x10d   : > { %936 = vst [vmem:[%s1492_s19 + $0x70] sm:$0xff] %v904_v4  ;;  %v920_v9 = vsel %vm856_vm12, %v824_v0, %v888_v5  ;;  %vm854_vm14 = vcmp.ge.f32.partialorder %v822_v7, 0.0  ;;  %v886_v11 = vmul.f32 0.2, %v822_v7  ;;  %v825_v13 = vadd.f32 %v1191_v50, %v1483_v23 }
 0x10e   : > { %952 = vst [vmem:[%s1492_s19 + $0xf0] sm:$0xff] %v920_v9  ;;  %v902_v10 = vsel %vm838_vm13, %v806_v1, %v870_v6  ;;  %vm841_vm15 = vcmp.ge.f32.partialorder %v809_v8, 0.0  ;;  %v873_v12 = vmul.f32 0.2, %v809_v8  ;;  %v807_v14 = vadd.f32 %v1483_v23, %v612_v51  ;;  %961 = sbr.rel (!%p1416_p4) target bundleno = 305 (0x131), region = 44 }
 0x10f   : > { %934 = vst [vmem:[%s1492_s19 + $0x60] sm:$0xff] %v902_v10  ;;  %v823_v15 = vadd.f32 %v1483_v23, %v676_v55  ;;  %v918_v16 = vsel %vm854_vm14, %v822_v7, %v886_v11  ;;  %vm857_vm0 = vcmp.ge.f32.partialorder %v825_v13, 0.0  ;;  %v889_v18 = vmul.f32 0.2, %v825_v13 }
 0x110   : > { %950 = vst [vmem:[%s1492_s19 + $0xe0] sm:$0xff] %v918_v16  ;;  %v905_v17 = vsel %vm841_vm15, %v809_v8, %v873_v12  ;;  %vm839_vm1 = vcmp.ge.f32.partialorder %v807_v14, 0.0  ;;  %v871_v19 = vmul.f32 0.2, %v807_v14 }
 0x111   : > { %937 = vst [vmem:[%s1492_s19 + $0x78] sm:$0xff] %v905_v17  ;;  %vm855_vm2 = vcmp.ge.f32.partialorder %v823_v15, 0.0  ;;  %v887_v20 = vmul.f32 0.2, %v823_v15  ;;  %v921_v21 = vsel %vm857_vm0, %v825_v13, %v889_v18 }
 0x112   : > { %953 = vst [vmem:[%s1492_s19 + $0xf8] sm:$0xff] %v921_v21  ;;  %v903_v22 = vsel %vm839_vm1, %v807_v14, %v871_v19 }
 0x113   : > { %v919_v24 = vsel %vm855_vm2, %v823_v15, %v887_v20  ;;  %935 = vst [vmem:[%s1492_s19 + $0x68] sm:$0xff] %v903_v22 }
 0x114   : > { %951 = vst [vmem:[%s1492_s19 + $0xe8] sm:$0xff] %v919_v24 }
 0x115   : > { %s1635_s23 = smov (!%p964_p12, %s963_s23), 32 }
 0x116   : > { %s1560_s26 = sshll.u32 %s1635_s23, 7 }
 0x117   : > { %s968_s27 = ssub.s32 4096, %s1560_s26 }
 0x118   : > { %969 = vsyncadd %s1555_s21, %s968_s27  ;;  %p1131_p13 = scmp.ne.s32.totalorder %s1560_s26, 0  ;;  %s1137_s28 = sshll.u32 %s1342_s15, 12 }
 0x119   : > { %s1569_s4 = scalar_lea.hbm %s1624_s3, %s1137_s28  ;;  %s975_s30 = sshll.u32 %s1492_s19, 4  ;;  %s1572_s30 = int_to_ptr.vmem [resolvable:$true] %s975_s30 }
 0x11a   : > { %s1272_s5 = scalar_lea.vmem %s1572_s30, %s1560_s26  ;;  %s1353_s6 = smov [#allocation2]  }
 0x11b   : > { %p1273_p0 = scmp.ne.s32.totalorder %s1572_s30, %s1272_s5  ;;  %s1276_s7 = sshll.u32 %s1353_s6, 4  ;;  %s1277_s7 = int_to_ptr.vmem [resolvable:$false] %s1276_s7 }
 0x11c   : > { %s1278_s15 = scalar_lea.vmem %s1277_s7, 8192  ;;  %p1279_p3 = scmp.lt.s32.totalorder %s1572_s30, %s1277_s7 }
 0x11d   : > { %p1274_p1 = pnand %p1273_p0, %p1131_p13  ;;  %p1280_p4 = scmp.lt.s32.totalorder %s1278_s15, %s1272_s5 }
 0x11f   : > { %p1275_p2 = pneg %p1274_p1  ;;  %p1281_p5 = por %p1280_p4, %p1279_p3 }
 0x121   : > { %p1282_p6 = pnand %p1281_p5, %p1275_p2 }
 0x123   : > { %1285 = shalt.err (!%p1282_p6)
}
 0x124   : > { %s1286_s8 = scalar_lea.hbm %s1569_s4, %s1560_s26  ;;  %s1290_s11 = scalar_lea.hbm %s1624_s3, 25088 }
 0x125   : > { %p1287_p7 = scmp.ne.s32.totalorder %s1569_s4, %s1286_s8  ;;  %p1291_p11 = scmp.lt.u32.totalorder %s1569_s4, %s1624_s3 }
 0x126   : > { %p1292_p12 = scmp.lt.u32.totalorder %s1290_s11, %s1286_s8  ;;  %p1294_p1 = scmp.lt.u32.totalorder %s1286_s8, %s1569_s4 }
 0x127   : > { %p1288_p9 = pnand %p1287_p7, %p1131_p13 }
 0x128   : > { %p1293_p0 = por %p1292_p12, %p1291_p11 }
 0x129   : > { %p1289_p10 = pneg %p1288_p9 }
 0x12a   : > { %p1295_p2 = por %p1294_p1, %p1293_p0 }
 0x12c   : > { %p1296_p3 = pnand %p1295_p2, %p1289_p10 }
 0x12e   : > { %1299 = shalt.err (!%p1296_p3)
}
 0x12f   : > { %s1354_s23 = smov 128   ;;  %s1355_s27 = smov 8  }
 0x130   : > { %981 = dma.vmem_to_hbm [thread:$0]  (%p1131_p13), %s1572_s30, %s1560_s26, %s1569_s4, %s1555_s21, %s1354_s23, %s1354_s23, %s1355_s27  }
 0x131 PF: > { %p1201_p4 = scmp.ge.s32.totalorder %s1350_s17, 2  ;;  %s990_s28 = sand.u32 1, %s1330_s12  }
 0x132   : > { %s991_s29 = scalar_lea.sflag [#allocation3], %s990_s28 }
 0x133   : > { %p1198_p5 = pnand %p1201_p4, %p1423_p8 }
 0x135   : > { %1325 = dma.done.wait (!%p1198_p5), %s991_s29, 4096  }
 0x136   : > { %1327 = vsyncadd (!%p1198_p5), %s991_s29, 4294963200  ;;  %s16_s17 = sadd.s32 1, %s1350_s17   ;;  %s1627_s12 = smov %s1334_s13 }
 0x137   : > { %p13_p6 = scmp.ge.s32.totalorder %s16_s17, 9   ;;  %s1628_s13 = smov %s1338_s14 }
 0x138   : > { %s1629_s14 = smov %s1429_s25  ;;  %s1630_s15 = smov %s1346_s16 }
 0x139   : > { %s1631_s16 = smov %s1633_s20  ;;  %15 = sbr.rel (!%p13_p6) target bundleno = 4 (0x4), region = 81 }
 0x140   :  { %996 = vsyncpa [#allocation3], 1 }
 0x141   :  { %998 = vsyncpa [#allocation3 + $0x1], 1 }

</bundles_post_ra>
